<compile_context>
chip_gen: v6e
topology: v6e:2x2x1
jax: 0.10.0
libtpu: 0.0.40
codegen_flags: <defaults>
</compile_context>

<pallas_src>
import jax
import jax.numpy as jnp
from jax.experimental import pallas as pl
from jax.experimental.pallas import tpu as pltpu


def se_mul_kernel(g_ref, f_ref, o_ref):
    # Broadcast-multiply the (bc, 1) gate column across the hw spatial lanes.
    o_ref[...] = (f_ref[...] * g_ref[...]).astype(o_ref.dtype)


def se_gate_fused_kernel(x_ref, w_ref, b_ref, f_ref, o_ref):
    # Fallback path: 1x1 conv on a 1x1 spatial input == (bc,48)@(48,1) matvec.
    s = jnp.dot(w_ref[...], x_ref[...], preferred_element_type=jnp.float32)
    gate = jax.nn.sigmoid(s + b_ref[...])                   # (bc, 1)
    o_ref[...] = (f_ref[...] * gate).astype(o_ref.dtype)    # (bc, hw)


def _default_n_blocks(c_out: int) -> int:
    """2 blocks on v6e/v7x (per-block DMA already < per-step overhead; on v7x
    each TensorCore gets exactly one block); 4 on v5e where lower HBM BW makes
    extra pipeline steps buy real load/compute/store overlap."""
    try:
        kind = jax.devices()[0].device_kind.lower()
    except Exception:
        kind = ""
    n = 4 if ("v5 lite" in kind or "v5lite" in kind or "v5e" in kind) else 2
    # Fall back to a divisor that keeps sublane-aligned (multiple-of-8) blocks.
    while n > 1 and (c_out % n != 0 or (c_out // n) % 8 != 0):
        n -= 1
    return n


def se_gate(x_se_nchw, feat_nchw, weight_oihw, bias, *,
            n_blocks=None, precompute_gate=True, alias_feat=False):
    """x_se_nchw: (1, C_in, 1, 1); feat_nchw: (1, C_out, H, W);
    weight_oihw: (C_out, C_in, 1, 1); bias: (C_out,)."""
    n, c_in, _, _ = x_se_nchw.shape
    _, c_out, h, w = feat_nchw.shape
    assert n == 1
    hw = h * w
    if n_blocks is None:
        n_blocks = _default_n_blocks(c_out)
    assert c_out % n_blocks == 0
    bc = c_out // n_blocks                     # channels per block

    # Pure reshapes only -- no wrapper-side transposes / extra HBM traffic.
    x = x_se_nchw.reshape(c_in, 1)             # (48, 1)
    wm = weight_oihw.reshape(c_out, c_in)      # (768, 48)  (PyTorch OI layout)
    b = bias.reshape(c_out, 1)                 # (768, 1)
    feat = feat_nchw.reshape(c_out, hw)        # (768, 196) C-major, free reshape

    compiler_params = pltpu.CompilerParams(dimension_semantics=("parallel",))

    if precompute_gate:
        # Tiny (768,48)@(48,1) matvec + bias + sigmoid; left to XLA so it can
        # fuse upstream.  A ~3 KB gate replaces ~150 KB of x/w/b DMA inside
        # the memory-bound multiply kernel.
        gate = jax.nn.sigmoid(wm @ x + b)      # (768, 1) float32
        out = pl.pallas_call(
            se_mul_kernel,
            out_shape=jax.ShapeDtypeStruct((c_out, hw), feat.dtype),
            grid=(n_blocks,),
            in_specs=[
                pl.BlockSpec((bc, 1), lambda i: (i, 0)),    # gate slice
                pl.BlockSpec((bc, hw), lambda i: (i, 0)),   # feat slice
            ],
            out_specs=pl.BlockSpec((bc, hw), lambda i: (i, 0)),
            compiler_params=compiler_params,
            # feat is kernel input #1; alias it to the output when it is dead
            # after this op (saves a second (768,196) HBM buffer).
            input_output_aliases={1: 0} if alias_feat else {},
        )(gate, feat)
    else:
        # Original fully-fused path (gate recomputed per block inside Pallas).
        out = pl.pallas_call(
            se_gate_fused_kernel,
            out_shape=jax.ShapeDtypeStruct((c_out, hw), feat.dtype),
            grid=(n_blocks,),
            in_specs=[
                pl.BlockSpec((c_in, 1), lambda i: (0, 0)),   # x (index-invariant)
                pl.BlockSpec((bc, c_in), lambda i: (i, 0)),  # weight slice
                pl.BlockSpec((bc, 1), lambda i: (i, 0)),     # bias slice
                pl.BlockSpec((bc, hw), lambda i: (i, 0)),    # feat slice
            ],
            out_specs=pl.BlockSpec((bc, hw), lambda i: (i, 0)),
            compiler_params=compiler_params,
            input_output_aliases={3: 0} if alias_feat else {},
        )(x, wm, b, feat)

    # pure reshape back to NCHW
    return out.reshape(1, c_out, h, w)


if __name__ == "__main__":
    key = jax.random.PRNGKey(0)
    k1, k2, k3, k4 = jax.random.split(key, 4)

    C_IN, C_OUT, H, W = 48, 768, 14, 14

    x268 = jax.random.normal(k1, (1, C_IN, 1, 1), dtype=jnp.float32)
    x265 = jax.random.normal(k2, (1, C_OUT, H, W), dtype=jnp.float32)

    # deterministic conv parameters (Conv2d(48, 768, kernel_size=1))
    weight = jax.random.normal(k3, (C_OUT, C_IN, 1, 1), dtype=jnp.float32) * 0.05
    bias = jax.random.normal(k4, (C_OUT,), dtype=jnp.float32) * 0.05

    # plain-JAX reference
    ref_gate = jax.nn.sigmoid(
        jnp.einsum("oi,i->o", weight.reshape(C_OUT, C_IN), x268.reshape(C_IN)) + bias
    ).reshape(1, C_OUT, 1, 1)
    ref = ref_gate * x265

    # recommended path: gate precomputed, Pallas streams the feature map
    out = jax.block_until_ready(se_gate(x268, x265, weight, bias))
    assert out.shape == (1, C_OUT, H, W)
    assert jnp.allclose(out, ref, atol=1e-5, rtol=1e-5)

    # fallback fully-fused path, exercised once for coverage
    out_fused = jax.block_until_ready(
        se_gate(x268, x265, weight, bias, precompute_gate=False))
    assert jnp.allclose(out_fused, ref, atol=1e-5, rtol=1e-5)

    print("KERNEL_OK")
</pallas_src>

<mosaic_0001>
module attributes {stable_mosaic.version = 11 : i64} {
  func.func @se_mul_kernel(%arg0: i32, %arg1: memref<384x1xf32, #tpu.memory_space<vmem>>, %arg2: memref<384x196xf32, #tpu.memory_space<vmem>>, %arg3: memref<384x196xf32, #tpu.memory_space<vmem>>) attributes {dimension_semantics = [#tpu.dimension_semantics<parallel>], iteration_bounds = array<i64: 2>, scalar_prefetch = 0 : i64, scratch_operands = 0 : i64, tpu.core_type = #tpu.core_type<tc>, window_params = [{transform_indices = @transform_0, window_bounds = array<i64: 384, 1>}, {transform_indices = @transform_1, window_bounds = array<i64: 384, 196>}, {transform_indices = @transform_2, window_bounds = array<i64: 384, 196>}]} {
    %c0 = arith.constant 0 : index
    %c0_0 = arith.constant 0 : index
    %0 = vector.load %arg2[%c0, %c0_0] : memref<384x196xf32, #tpu.memory_space<vmem>>, vector<384x196xf32>
    %c0_1 = arith.constant 0 : index
    %c0_2 = arith.constant 0 : index
    %1 = vector.load %arg1[%c0_1, %c0_2] : memref<384x1xf32, #tpu.memory_space<vmem>>, vector<384x1xf32>
    %2 = vector.broadcast %1 : vector<384x1xf32> to vector<384x196xf32>
    %3 = arith.mulf %0, %2 : vector<384x196xf32>
    %c0_3 = arith.constant 0 : index
    %c0_4 = arith.constant 0 : index
    %4 = vector.load %arg3[%c0_3, %c0_4] : memref<384x196xf32, #tpu.memory_space<vmem>>, vector<384x196xf32>
    tpu.vector_store %arg3[%c0_3, %c0_4], %3 {strides = array<i32>} : memref<384x196xf32, #tpu.memory_space<vmem>>, vector<384x196xf32>,
    return
  }
  func.func @transform_0(%arg0: i32) -> (i32, i32) {
    %c0_i32 = arith.constant 0 : i32
    %c0_i32_0 = arith.constant 0 : i32
    return %arg0, %c0_i32 : i32, i32
  }
  func.func @transform_1(%arg0: i32) -> (i32, i32) {
    %c0_i32 = arith.constant 0 : i32
    %c0_i32_0 = arith.constant 0 : i32
    return %arg0, %c0_i32 : i32, i32
  }
  func.func @transform_2(%arg0: i32) -> (i32, i32) {
    %c0_i32 = arith.constant 0 : i32
    %c0_i32_0 = arith.constant 0 : i32
    return %arg0, %c0_i32 : i32, i32
  }
}

</mosaic_0001>

<bundles_post_ra>
// kernel: tpu_custom_call.1
= control target key start
LH: loop header
LB: loop body
LE: loop exit
PB: predicated region body
PF: predicated region fallthrough
CT: control target
= control target key end

     0   :  { %s870_s9 = smov 0   ;;  %s1188_s0 = inlined_call_operand.vmem [shape: f32[768,1], index: 0, kind: input, shape index: {}]   ;;  %s1189_s1 = inlined_call_operand.vmem [shape: f32[768,196], index: 1, kind: input, shape index: {}]   ;;  %s1190_s2 = inlined_call_operand.vmem [shape: f32[768,196], index: 2, kind: output, shape index: {}]  }
   0x1 LB: > { %s821_s10 = sadd.s32 4294967295, %s852_s9   ;;  %p825_p0 = scmp.ge.s32.totalorder %s852_s9, 1  ;;  %s852_s9 = sphi %s870_s9, %s12_s9  }
   0x2   : > { %p125_p1 = scmp.lt.s32.totalorder %s852_s9, 3 }
   0x4   : > { %p126_p2 = pnand %p825_p0, %p125_p1 }
   0x5   : > { %s154_s11 = smul.u32 (!%p126_p2), 48, %s821_s10 }
   0x6   : > { %129 = sbr.rel (%p126_p2) target bundleno = 235 (0xeb), region = 28 }
   0x7   : > { %p155_p3 = scmp.lt.s32.totalorder (!%p126_p2), %s154_s11, 95 }
   0xb   : > { %v854_v0 = vmov 0   ;;  %s1192_s11 = smov (!%p155_p3, %s154_s11), 95  ;;  %vm655_vm0 = vcmask 556032  }
   0xc   : > { %845 = vset.pattern.permute.xlu1 %v854_v0  ;;  %844 = vset.pattern.permute.xlu0 %v854_v0  ;;  %s826_s12 = sshll.u32 %s1192_s11, 3  ;;  %s833_s16 = sshll.u32 %s1192_s11, 4 }
   0xd   : > { %s884_s15 = scalar_lea.vmem %s1188_s0, %s826_s12  ;;  %s938_s19 = scalar_lea.vmem %s1189_s1, %s833_s16 }
   0xe   : > { %v272_v1 = vld [vmem:[%s884_s15 + $0x10] sm:$0xff]  ;;  %v270_v2 = vld [vmem:[%s884_s15] sm:$0xff]  ;;  %v273_v3 = vld [vmem:[%s884_s15 + $0x18] sm:$0xff]  ;;  %s947_s22 = scalar_lea.vmem %s1190_s2, %s833_s16 }
   0xf   : > { %330 = vperm.xlu1 %845, %v272_v1   ;;  %320 = vperm.xlu0 %844, %v270_v2   ;;  %v271_v4 = vld [vmem:[%s884_s15 + $0x8] sm:$0xff]  ;;  %v274_v6 = vld [vmem:[%s884_s15 + $0x20] sm:$0xff]  ;;  %v277_v7 = vld [vmem:[%s884_s15 + $0x38] sm:$0xff] }
  0x10   : > { %v275_v5 = vld [vmem:[%s884_s15 + $0x28] sm:$0xff]  ;;  %v276_v8 = vld [vmem:[%s884_s15 + $0x30] sm:$0xff]  ;;  %v278_v10 = vld [vmem:[%s884_s15 + $0x40] sm:$0xff] }
  0x11   : > { %v279_v9 = vld [vmem:[%s884_s15 + $0x48] sm:$0xff]  ;;  %v281_v11 = vld [vmem:[%s884_s15 + $0x58] sm:$0xff]  ;;  %v280_v12 = vld [vmem:[%s884_s15 + $0x50] sm:$0xff] }
  0x12   : > { %v283_v13 = vld [vmem:[%s884_s15 + $0x68] sm:$0xff]  ;;  %v282_v14 = vld [vmem:[%s884_s15 + $0x60] sm:$0xff]  ;;  %v285_v15 = vld [vmem:[%s884_s15 + $0x78] sm:$0xff] }
  0x13   : > { %335 = vperm.xlu1 %845, %v273_v3   ;;  %325 = vperm.xlu0 %844, %v271_v4   ;;  %v284_v16 = vld [vmem:[%s884_s15 + $0x70] sm:$0xff]  ;;  %v287_v17 = vld [vmem:[%s884_s15 + $0x88] sm:$0xff]  ;;  %v286_v18 = vld [vmem:[%s884_s15 + $0x80] sm:$0xff] }
  0x14   : > { %v289_v19 = vld [vmem:[%s884_s15 + $0x98] sm:$0xff]  ;;  %v288_v20 = vld [vmem:[%s884_s15 + $0x90] sm:$0xff]  ;;  %v291_v21 = vld [vmem:[%s884_s15 + $0xa8] sm:$0xff] }
  0x15   : > { %v290_v22 = vld [vmem:[%s884_s15 + $0xa0] sm:$0xff]  ;;  %v293_v23 = vld [vmem:[%s884_s15 + $0xb8] sm:$0xff]  ;;  %v292_v24 = vld [vmem:[%s884_s15 + $0xb0] sm:$0xff] }
  0x16   : > { %v295_v25 = vld [vmem:[%s884_s15 + $0xc8] sm:$0xff]  ;;  %v294_v26 = vld [vmem:[%s884_s15 + $0xc0] sm:$0xff]  ;;  %v297_v27 = vld [vmem:[%s884_s15 + $0xd8] sm:$0xff] }
  0x17   : > { %345 = vperm.xlu1 %845, %v275_v5   ;;  %340 = vperm.xlu0 %844, %v274_v6   ;;  %v296_v28 = vld [vmem:[%s884_s15 + $0xd0] sm:$0xff]  ;;  %v299_v29 = vld [vmem:[%s884_s15 + $0xe8] sm:$0xff]  ;;  %v298_v30 = vld [vmem:[%s884_s15 + $0xe0] sm:$0xff] }
  0x18   : > { %v301_v31 = vld [vmem:[%s884_s15 + $0xf8] sm:$0xff]  ;;  %v300_v32 = vld [vmem:[%s884_s15 + $0xf0] sm:$0xff]  ;;  %v303_v33 = vld [vmem:[%s884_s15 + $0x108] sm:$0xff] }
  0x19   : > { %v302_v34 = vld [vmem:[%s884_s15 + $0x100] sm:$0xff]  ;;  %v305_v35 = vld [vmem:[%s884_s15 + $0x118] sm:$0xff]  ;;  %v304_v36 = vld [vmem:[%s884_s15 + $0x110] sm:$0xff] }
  0x1a   : > { %v307_v37 = vld [vmem:[%s884_s15 + $0x128] sm:$0xff]  ;;  %v306_v38 = vld [vmem:[%s884_s15 + $0x120] sm:$0xff]  ;;  %v309_v39 = vld [vmem:[%s884_s15 + $0x138] sm:$0xff] }
  0x1b   : > { %355 = vperm.xlu1 %845, %v277_v7   ;;  %350 = vperm.xlu0 %844, %v276_v8   ;;  %v308_v40 = vld [vmem:[%s884_s15 + $0x130] sm:$0xff]  ;;  %v311_v41 = vld [vmem:[%s884_s15 + $0x148] sm:$0xff]  ;;  %v310_v42 = vld [vmem:[%s884_s15 + $0x140] sm:$0xff] }
  0x1c   : > { %v313_v43 = vld [vmem:[%s884_s15 + $0x158] sm:$0xff]  ;;  %v312_v44 = vld [vmem:[%s884_s15 + $0x150] sm:$0xff]  ;;  %v315_v45 = vld [vmem:[%s884_s15 + $0x168] sm:$0xff] }
  0x1d   : > { %v314_v46 = vld [vmem:[%s884_s15 + $0x160] sm:$0xff]  ;;  %v317_v47 = vld [vmem:[%s884_s15 + $0x178] sm:$0xff]  ;;  %v316_v48 = vld [vmem:[%s884_s15 + $0x170] sm:$0xff] }
  0x1e   : > { %v178_v49 = vld [vmem:[%s938_s19 + $0x20] sm:$0xff]  ;;  %v179_v50 = vld [vmem:[%s938_s19 + $0x28] sm:$0xff]  ;;  %v180_v59 = vld [vmem:[%s938_s19 + $0x30] sm:$0xff] }
  0x1f   : > { %365 = vperm.xlu1 %845, %v279_v9   ;;  %360 = vperm.xlu0 %844, %v278_v10   ;;  %v174_v51 = vld [vmem:[%s938_s19] sm:$0xff]  ;;  %v175_v52 = vld [vmem:[%s938_s19 + $0x8] sm:$0xff]  ;;  %v181_v60 = vld [vmem:[%s938_s19 + $0x38] sm:$0xff] }
  0x20   : > { %v176_v61 = vld [vmem:[%s938_s19 + $0x10] sm:$0xff]  ;;  %v177_v62 = vld [vmem:[%s938_s19 + $0x18] sm:$0xff]  ;;  %v182_v7 = vld [vmem:[%s938_s19 + $0x40] sm:$0xff] }
  0x21   : > { %v184_v5 = vld [vmem:[%s938_s19 + $0x50] sm:$0xff]  ;;  %v185_v6 = vld [vmem:[%s938_s19 + $0x58] sm:$0xff]  ;;  %v183_v8 = vld [vmem:[%s938_s19 + $0x48] sm:$0xff] }
  0x23   : > { %375 = vperm.xlu1 %845, %v281_v11   ;;  %370 = vperm.xlu0 %844, %v280_v12  }
  0x27   : > { %385 = vperm.xlu1 %845, %v283_v13   ;;  %380 = vperm.xlu0 %844, %v282_v14  }
  0x2b   : > { %395 = vperm.xlu1 %845, %v285_v15   ;;  %390 = vperm.xlu0 %844, %v284_v16   ;;  %v188_v15 = vld [vmem:[%s938_s19 + $0x70] sm:$0xff]  ;;  %v189_v16 = vld [vmem:[%s938_s19 + $0x78] sm:$0xff] }
  0x2f   : > { %405 = vperm.xlu1 %845, %v287_v17   ;;  %400 = vperm.xlu0 %844, %v286_v18   ;;  %v186_v17 = vld [vmem:[%s938_s19 + $0x60] sm:$0xff]  ;;  %v187_v18 = vld [vmem:[%s938_s19 + $0x68] sm:$0xff] }
  0x33   : > { %415 = vperm.xlu1 %845, %v289_v19   ;;  %410 = vperm.xlu0 %844, %v288_v20  }
  0x37   : > { %425 = vperm.xlu1 %845, %v291_v21   ;;  %420 = vperm.xlu0 %844, %v290_v22  }
  0x3b   : > { %435 = vperm.xlu1 %845, %v293_v23   ;;  %430 = vperm.xlu0 %844, %v292_v24  }
  0x3f   : > { %445 = vperm.xlu1 %845, %v295_v25   ;;  %440 = vperm.xlu0 %844, %v294_v26   ;;  %v192_v25 = vld [vmem:[%s938_s19 + $0x90] sm:$0xff]  ;;  %v193_v26 = vld [vmem:[%s938_s19 + $0x98] sm:$0xff] }
  0x43   : > { %455 = vperm.xlu1 %845, %v297_v27   ;;  %450 = vperm.xlu0 %844, %v296_v28   ;;  %v190_v27 = vld [vmem:[%s938_s19 + $0x80] sm:$0xff]  ;;  %v191_v28 = vld [vmem:[%s938_s19 + $0x88] sm:$0xff] }
  0x47   : > { %465 = vperm.xlu1 %845, %v299_v29   ;;  %460 = vperm.xlu0 %844, %v298_v30  }
  0x4b   : > { %475 = vperm.xlu1 %845, %v301_v31   ;;  %470 = vperm.xlu0 %844, %v300_v32  }
  0x4f   : > { %485 = vperm.xlu1 %845, %v303_v33   ;;  %480 = vperm.xlu0 %844, %v302_v34  }
  0x53   : > { %495 = vperm.xlu1 %845, %v305_v35   ;;  %490 = vperm.xlu0 %844, %v304_v36   ;;  %v196_v35 = vld [vmem:[%s938_s19 + $0xb0] sm:$0xff]  ;;  %v197_v36 = vld [vmem:[%s938_s19 + $0xb8] sm:$0xff] }
  0x57   : > { %505 = vperm.xlu1 %845, %v307_v37   ;;  %500 = vperm.xlu0 %844, %v306_v38   ;;  %v194_v37 = vld [vmem:[%s938_s19 + $0xa0] sm:$0xff]  ;;  %v195_v38 = vld [vmem:[%s938_s19 + $0xa8] sm:$0xff] }
  0x5b   : > { %515 = vperm.xlu1 %845, %v309_v39   ;;  %510 = vperm.xlu0 %844, %v308_v40  }
  0x5f   : > { %525 = vperm.xlu1 %845, %v311_v41   ;;  %520 = vperm.xlu0 %844, %v310_v42  }
  0x63   : > { %535 = vperm.xlu1 %845, %v313_v43   ;;  %530 = vperm.xlu0 %844, %v312_v44  }
  0x67   : > { %545 = vperm.xlu1 %845, %v315_v45   ;;  %540 = vperm.xlu0 %844, %v314_v46   ;;  %v200_v45 = vld [vmem:[%s938_s19 + $0xd0] sm:$0xff]  ;;  %v201_v46 = vld [vmem:[%s938_s19 + $0xd8] sm:$0xff] }
  0x6b   : > { %555 = vperm.xlu1 %845, %v317_v47   ;;  %550 = vperm.xlu0 %844, %v316_v48   ;;  %v198_v47 = vld [vmem:[%s938_s19 + $0xc0] sm:$0xff]  ;;  %v199_v48 = vld [vmem:[%s938_s19 + $0xc8] sm:$0xff] }
  0x8a   : > { %v331_v53 = vpop.permute.xlu1 %330  ;;  %v321_v54 = vpop.permute.xlu0 %320 }
  0x8b   : > { %v562_v55 = vmul.f32 %v331_v53, %v178_v49  ;;  %v563_v56 = vmul.f32 %v331_v53, %v179_v50  ;;  %v558_v57 = vmul.f32 %v321_v54, %v174_v51  ;;  %v559_v58 = vmul.f32 %v321_v54, %v175_v52 }
  0x8d   : > { %659 = vst [vmem:[%s947_s22 + $0x20] sm:$0xff] %v562_v55  ;;  %660 = vst.msk [vmem:[%s947_s22 + $0x28] sm:$0xff] %vm655_vm0, %v563_v56  ;;  %v204_v55 = vld [vmem:[%s938_s19 + $0xf0] sm:$0xff]  ;;  %v205_v56 = vld [vmem:[%s938_s19 + $0xf8] sm:$0xff] }
  0x8e   : > { %654 = vst [vmem:[%s947_s22] sm:$0xff] %v558_v57  ;;  %656 = vst.msk [vmem:[%s947_s22 + $0x8] sm:$0xff] %vm655_vm0, %v559_v58  ;;  %v336_v63 = vpop.permute.xlu1 %335  ;;  %v326_v0 = vpop.permute.xlu0 %325  ;;  %v202_v57 = vld [vmem:[%s938_s19 + $0xe0] sm:$0xff]  ;;  %v203_v58 = vld [vmem:[%s938_s19 + $0xe8] sm:$0xff] }
  0x8f   : > { %v564_v1 = vmul.f32 %v336_v63, %v180_v59  ;;  %v565_v2 = vmul.f32 %v336_v63, %v181_v60  ;;  %v560_v3 = vmul.f32 %v326_v0, %v176_v61  ;;  %v561_v4 = vmul.f32 %v326_v0, %v177_v62 }
  0x91   : > { %661 = vst [vmem:[%s947_s22 + $0x30] sm:$0xff] %v564_v1  ;;  %662 = vst.msk [vmem:[%s947_s22 + $0x38] sm:$0xff] %vm655_vm0, %v565_v2  ;;  %v208_v1 = vld [vmem:[%s938_s19 + $0x110] sm:$0xff]  ;;  %v209_v2 = vld [vmem:[%s938_s19 + $0x118] sm:$0xff] }
  0x92   : > { %657 = vst [vmem:[%s947_s22 + $0x10] sm:$0xff] %v560_v3  ;;  %658 = vst.msk [vmem:[%s947_s22 + $0x18] sm:$0xff] %vm655_vm0, %v561_v4  ;;  %v346_v9 = vpop.permute.xlu1 %345  ;;  %v341_v10 = vpop.permute.xlu0 %340  ;;  %v206_v3 = vld [vmem:[%s938_s19 + $0x100] sm:$0xff]  ;;  %v207_v4 = vld [vmem:[%s938_s19 + $0x108] sm:$0xff] }
  0x93   : > { %v568_v11 = vmul.f32 %v346_v9, %v184_v5  ;;  %v569_v12 = vmul.f32 %v346_v9, %v185_v6  ;;  %v566_v13 = vmul.f32 %v341_v10, %v182_v7  ;;  %v567_v14 = vmul.f32 %v341_v10, %v183_v8 }
  0x95   : > { %665 = vst [vmem:[%s947_s22 + $0x50] sm:$0xff] %v568_v11  ;;  %666 = vst.msk [vmem:[%s947_s22 + $0x58] sm:$0xff] %vm655_vm0, %v569_v12  ;;  %v212_v11 = vld [vmem:[%s938_s19 + $0x130] sm:$0xff]  ;;  %v213_v12 = vld [vmem:[%s938_s19 + $0x138] sm:$0xff] }
  0x96   : > { %663 = vst [vmem:[%s947_s22 + $0x40] sm:$0xff] %v566_v13  ;;  %664 = vst.msk [vmem:[%s947_s22 + $0x48] sm:$0xff] %vm655_vm0, %v567_v14  ;;  %v356_v19 = vpop.permute.xlu1 %355  ;;  %v351_v20 = vpop.permute.xlu0 %350  ;;  %v210_v13 = vld [vmem:[%s938_s19 + $0x120] sm:$0xff]  ;;  %v211_v14 = vld [vmem:[%s938_s19 + $0x128] sm:$0xff] }
  0x97   : > { %v572_v21 = vmul.f32 %v356_v19, %v188_v15  ;;  %v573_v22 = vmul.f32 %v356_v19, %v189_v16  ;;  %v570_v23 = vmul.f32 %v351_v20, %v186_v17  ;;  %v571_v24 = vmul.f32 %v351_v20, %v187_v18 }
  0x99   : > { %669 = vst [vmem:[%s947_s22 + $0x70] sm:$0xff] %v572_v21  ;;  %670 = vst.msk [vmem:[%s947_s22 + $0x78] sm:$0xff] %vm655_vm0, %v573_v22  ;;  %v216_v21 = vld [vmem:[%s938_s19 + $0x150] sm:$0xff]  ;;  %v217_v22 = vld [vmem:[%s938_s19 + $0x158] sm:$0xff] }
  0x9a   : > { %667 = vst [vmem:[%s947_s22 + $0x60] sm:$0xff] %v570_v23  ;;  %668 = vst.msk [vmem:[%s947_s22 + $0x68] sm:$0xff] %vm655_vm0, %v571_v24  ;;  %v366_v29 = vpop.permute.xlu1 %365  ;;  %v361_v30 = vpop.permute.xlu0 %360  ;;  %v214_v23 = vld [vmem:[%s938_s19 + $0x140] sm:$0xff]  ;;  %v215_v24 = vld [vmem:[%s938_s19 + $0x148] sm:$0xff] }
  0x9b   : > { %v576_v31 = vmul.f32 %v366_v29, %v192_v25  ;;  %v577_v32 = vmul.f32 %v366_v29, %v193_v26  ;;  %v574_v33 = vmul.f32 %v361_v30, %v190_v27  ;;  %v575_v34 = vmul.f32 %v361_v30, %v191_v28 }
  0x9d   : > { %673 = vst [vmem:[%s947_s22 + $0x90] sm:$0xff] %v576_v31  ;;  %674 = vst.msk [vmem:[%s947_s22 + $0x98] sm:$0xff] %vm655_vm0, %v577_v32  ;;  %v220_v31 = vld [vmem:[%s938_s19 + $0x170] sm:$0xff]  ;;  %v221_v32 = vld [vmem:[%s938_s19 + $0x178] sm:$0xff] }
  0x9e   : > { %671 = vst [vmem:[%s947_s22 + $0x80] sm:$0xff] %v574_v33  ;;  %672 = vst.msk [vmem:[%s947_s22 + $0x88] sm:$0xff] %vm655_vm0, %v575_v34  ;;  %v376_v39 = vpop.permute.xlu1 %375  ;;  %v371_v40 = vpop.permute.xlu0 %370  ;;  %v218_v33 = vld [vmem:[%s938_s19 + $0x160] sm:$0xff]  ;;  %v219_v34 = vld [vmem:[%s938_s19 + $0x168] sm:$0xff] }
  0x9f   : > { %v580_v41 = vmul.f32 %v376_v39, %v196_v35  ;;  %v581_v42 = vmul.f32 %v376_v39, %v197_v36  ;;  %v578_v43 = vmul.f32 %v371_v40, %v194_v37  ;;  %v579_v44 = vmul.f32 %v371_v40, %v195_v38 }
  0xa1   : > { %677 = vst [vmem:[%s947_s22 + $0xb0] sm:$0xff] %v580_v41  ;;  %678 = vst.msk [vmem:[%s947_s22 + $0xb8] sm:$0xff] %vm655_vm0, %v581_v42  ;;  %v224_v41 = vld [vmem:[%s938_s19 + $0x190] sm:$0xff]  ;;  %v225_v42 = vld [vmem:[%s938_s19 + $0x198] sm:$0xff] }
  0xa2   : > { %675 = vst [vmem:[%s947_s22 + $0xa0] sm:$0xff] %v578_v43  ;;  %676 = vst.msk [vmem:[%s947_s22 + $0xa8] sm:$0xff] %vm655_vm0, %v579_v44  ;;  %v386_v49 = vpop.permute.xlu1 %385  ;;  %v381_v50 = vpop.permute.xlu0 %380  ;;  %v222_v43 = vld [vmem:[%s938_s19 + $0x180] sm:$0xff]  ;;  %v223_v44 = vld [vmem:[%s938_s19 + $0x188] sm:$0xff] }
  0xa3   : > { %v584_v51 = vmul.f32 %v386_v49, %v200_v45  ;;  %v585_v52 = vmul.f32 %v386_v49, %v201_v46  ;;  %v582_v53 = vmul.f32 %v381_v50, %v198_v47  ;;  %v583_v54 = vmul.f32 %v381_v50, %v199_v48 }
  0xa5   : > { %681 = vst [vmem:[%s947_s22 + $0xd0] sm:$0xff] %v584_v51  ;;  %682 = vst.msk [vmem:[%s947_s22 + $0xd8] sm:$0xff] %vm655_vm0, %v585_v52  ;;  %v228_v51 = vld [vmem:[%s938_s19 + $0x1b0] sm:$0xff]  ;;  %v229_v52 = vld [vmem:[%s938_s19 + $0x1b8] sm:$0xff] }
  0xa6   : > { %679 = vst [vmem:[%s947_s22 + $0xc0] sm:$0xff] %v582_v53  ;;  %680 = vst.msk [vmem:[%s947_s22 + $0xc8] sm:$0xff] %vm655_vm0, %v583_v54  ;;  %v396_v59 = vpop.permute.xlu1 %395  ;;  %v391_v60 = vpop.permute.xlu0 %390  ;;  %v226_v53 = vld [vmem:[%s938_s19 + $0x1a0] sm:$0xff]  ;;  %v227_v54 = vld [vmem:[%s938_s19 + $0x1a8] sm:$0xff] }
  0xa7   : > { %v588_v61 = vmul.f32 %v396_v59, %v204_v55  ;;  %v589_v62 = vmul.f32 %v396_v59, %v205_v56  ;;  %v586_v63 = vmul.f32 %v391_v60, %v202_v57  ;;  %v587_v0 = vmul.f32 %v391_v60, %v203_v58 }
  0xa9   : > { %685 = vst [vmem:[%s947_s22 + $0xf0] sm:$0xff] %v588_v61  ;;  %686 = vst.msk [vmem:[%s947_s22 + $0xf8] sm:$0xff] %vm655_vm0, %v589_v62  ;;  %v232_v61 = vld [vmem:[%s938_s19 + $0x1d0] sm:$0xff]  ;;  %v233_v62 = vld [vmem:[%s938_s19 + $0x1d8] sm:$0xff] }
  0xaa   : > { %683 = vst [vmem:[%s947_s22 + $0xe0] sm:$0xff] %v586_v63  ;;  %684 = vst.msk [vmem:[%s947_s22 + $0xe8] sm:$0xff] %vm655_vm0, %v587_v0  ;;  %v406_v5 = vpop.permute.xlu1 %405  ;;  %v401_v6 = vpop.permute.xlu0 %400  ;;  %v230_v63 = vld [vmem:[%s938_s19 + $0x1c0] sm:$0xff]  ;;  %v231_v0 = vld [vmem:[%s938_s19 + $0x1c8] sm:$0xff] }
  0xab   : > { %v592_v7 = vmul.f32 %v406_v5, %v208_v1  ;;  %v593_v8 = vmul.f32 %v406_v5, %v209_v2  ;;  %v590_v9 = vmul.f32 %v401_v6, %v206_v3  ;;  %v591_v10 = vmul.f32 %v401_v6, %v207_v4 }
  0xad   : > { %689 = vst [vmem:[%s947_s22 + $0x110] sm:$0xff] %v592_v7  ;;  %690 = vst.msk [vmem:[%s947_s22 + $0x118] sm:$0xff] %vm655_vm0, %v593_v8  ;;  %v236_v7 = vld [vmem:[%s938_s19 + $0x1f0] sm:$0xff]  ;;  %v237_v8 = vld [vmem:[%s938_s19 + $0x1f8] sm:$0xff] }
  0xae   : > { %687 = vst [vmem:[%s947_s22 + $0x100] sm:$0xff] %v590_v9  ;;  %688 = vst.msk [vmem:[%s947_s22 + $0x108] sm:$0xff] %vm655_vm0, %v591_v10  ;;  %v416_v15 = vpop.permute.xlu1 %415  ;;  %v411_v16 = vpop.permute.xlu0 %410  ;;  %v234_v9 = vld [vmem:[%s938_s19 + $0x1e0] sm:$0xff]  ;;  %v235_v10 = vld [vmem:[%s938_s19 + $0x1e8] sm:$0xff] }
  0xaf   : > { %v596_v17 = vmul.f32 %v416_v15, %v212_v11  ;;  %v597_v18 = vmul.f32 %v416_v15, %v213_v12  ;;  %v594_v19 = vmul.f32 %v411_v16, %v210_v13  ;;  %v595_v20 = vmul.f32 %v411_v16, %v211_v14 }
  0xb1   : > { %693 = vst [vmem:[%s947_s22 + $0x130] sm:$0xff] %v596_v17  ;;  %694 = vst.msk [vmem:[%s947_s22 + $0x138] sm:$0xff] %vm655_vm0, %v597_v18  ;;  %v240_v17 = vld [vmem:[%s938_s19 + $0x210] sm:$0xff]  ;;  %v241_v18 = vld [vmem:[%s938_s19 + $0x218] sm:$0xff] }
  0xb2   : > { %691 = vst [vmem:[%s947_s22 + $0x120] sm:$0xff] %v594_v19  ;;  %692 = vst.msk [vmem:[%s947_s22 + $0x128] sm:$0xff] %vm655_vm0, %v595_v20  ;;  %v426_v25 = vpop.permute.xlu1 %425  ;;  %v421_v26 = vpop.permute.xlu0 %420  ;;  %v238_v19 = vld [vmem:[%s938_s19 + $0x200] sm:$0xff]  ;;  %v239_v20 = vld [vmem:[%s938_s19 + $0x208] sm:$0xff] }
  0xb3   : > { %v600_v27 = vmul.f32 %v426_v25, %v216_v21  ;;  %v601_v28 = vmul.f32 %v426_v25, %v217_v22  ;;  %v598_v29 = vmul.f32 %v421_v26, %v214_v23  ;;  %v599_v30 = vmul.f32 %v421_v26, %v215_v24 }
  0xb5   : > { %697 = vst [vmem:[%s947_s22 + $0x150] sm:$0xff] %v600_v27  ;;  %698 = vst.msk [vmem:[%s947_s22 + $0x158] sm:$0xff] %vm655_vm0, %v601_v28  ;;  %v244_v27 = vld [vmem:[%s938_s19 + $0x230] sm:$0xff]  ;;  %v245_v28 = vld [vmem:[%s938_s19 + $0x238] sm:$0xff] }
  0xb6   : > { %695 = vst [vmem:[%s947_s22 + $0x140] sm:$0xff] %v598_v29  ;;  %696 = vst.msk [vmem:[%s947_s22 + $0x148] sm:$0xff] %vm655_vm0, %v599_v30  ;;  %v436_v35 = vpop.permute.xlu1 %435  ;;  %v431_v36 = vpop.permute.xlu0 %430  ;;  %v242_v29 = vld [vmem:[%s938_s19 + $0x220] sm:$0xff]  ;;  %v243_v30 = vld [vmem:[%s938_s19 + $0x228] sm:$0xff] }
  0xb7   : > { %v604_v37 = vmul.f32 %v436_v35, %v220_v31  ;;  %v605_v38 = vmul.f32 %v436_v35, %v221_v32  ;;  %v602_v39 = vmul.f32 %v431_v36, %v218_v33  ;;  %v603_v40 = vmul.f32 %v431_v36, %v219_v34 }
  0xb9   : > { %701 = vst [vmem:[%s947_s22 + $0x170] sm:$0xff] %v604_v37  ;;  %702 = vst.msk [vmem:[%s947_s22 + $0x178] sm:$0xff] %vm655_vm0, %v605_v38  ;;  %v248_v37 = vld [vmem:[%s938_s19 + $0x250] sm:$0xff]  ;;  %v249_v38 = vld [vmem:[%s938_s19 + $0x258] sm:$0xff] }
  0xba   : > { %699 = vst [vmem:[%s947_s22 + $0x160] sm:$0xff] %v602_v39  ;;  %700 = vst.msk [vmem:[%s947_s22 + $0x168] sm:$0xff] %vm655_vm0, %v603_v40  ;;  %v446_v45 = vpop.permute.xlu1 %445  ;;  %v441_v46 = vpop.permute.xlu0 %440  ;;  %v246_v39 = vld [vmem:[%s938_s19 + $0x240] sm:$0xff]  ;;  %v247_v40 = vld [vmem:[%s938_s19 + $0x248] sm:$0xff] }
  0xbb   : > { %v608_v47 = vmul.f32 %v446_v45, %v224_v41  ;;  %v609_v48 = vmul.f32 %v446_v45, %v225_v42  ;;  %v606_v49 = vmul.f32 %v441_v46, %v222_v43  ;;  %v607_v50 = vmul.f32 %v441_v46, %v223_v44 }
  0xbd   : > { %705 = vst [vmem:[%s947_s22 + $0x190] sm:$0xff] %v608_v47  ;;  %706 = vst.msk [vmem:[%s947_s22 + $0x198] sm:$0xff] %vm655_vm0, %v609_v48  ;;  %v252_v47 = vld [vmem:[%s938_s19 + $0x270] sm:$0xff]  ;;  %v253_v48 = vld [vmem:[%s938_s19 + $0x278] sm:$0xff] }
  0xbe   : > { %703 = vst [vmem:[%s947_s22 + $0x180] sm:$0xff] %v606_v49  ;;  %704 = vst.msk [vmem:[%s947_s22 + $0x188] sm:$0xff] %vm655_vm0, %v607_v50  ;;  %v456_v55 = vpop.permute.xlu1 %455  ;;  %v451_v56 = vpop.permute.xlu0 %450  ;;  %v250_v49 = vld [vmem:[%s938_s19 + $0x260] sm:$0xff]  ;;  %v251_v50 = vld [vmem:[%s938_s19 + $0x268] sm:$0xff] }
  0xbf   : > { %v612_v57 = vmul.f32 %v456_v55, %v228_v51  ;;  %v613_v58 = vmul.f32 %v456_v55, %v229_v52  ;;  %v610_v59 = vmul.f32 %v451_v56, %v226_v53  ;;  %v611_v60 = vmul.f32 %v451_v56, %v227_v54 }
  0xc1   : > { %709 = vst [vmem:[%s947_s22 + $0x1b0] sm:$0xff] %v612_v57  ;;  %710 = vst.msk [vmem:[%s947_s22 + $0x1b8] sm:$0xff] %vm655_vm0, %v613_v58  ;;  %v256_v57 = vld [vmem:[%s938_s19 + $0x290] sm:$0xff]  ;;  %v257_v58 = vld [vmem:[%s938_s19 + $0x298] sm:$0xff] }
  0xc2   : > { %707 = vst [vmem:[%s947_s22 + $0x1a0] sm:$0xff] %v610_v59  ;;  %708 = vst.msk [vmem:[%s947_s22 + $0x1a8] sm:$0xff] %vm655_vm0, %v611_v60  ;;  %v466_v1 = vpop.permute.xlu1 %465  ;;  %v461_v2 = vpop.permute.xlu0 %460  ;;  %v254_v59 = vld [vmem:[%s938_s19 + $0x280] sm:$0xff]  ;;  %v255_v60 = vld [vmem:[%s938_s19 + $0x288] sm:$0xff] }
  0xc3   : > { %v616_v3 = vmul.f32 %v466_v1, %v232_v61  ;;  %v617_v4 = vmul.f32 %v466_v1, %v233_v62  ;;  %v614_v5 = vmul.f32 %v461_v2, %v230_v63  ;;  %v615_v6 = vmul.f32 %v461_v2, %v231_v0 }
  0xc5   : > { %713 = vst [vmem:[%s947_s22 + $0x1d0] sm:$0xff] %v616_v3  ;;  %714 = vst.msk [vmem:[%s947_s22 + $0x1d8] sm:$0xff] %vm655_vm0, %v617_v4  ;;  %v260_v3 = vld [vmem:[%s938_s19 + $0x2b0] sm:$0xff]  ;;  %v261_v4 = vld [vmem:[%s938_s19 + $0x2b8] sm:$0xff] }
  0xc6   : > { %711 = vst [vmem:[%s947_s22 + $0x1c0] sm:$0xff] %v614_v5  ;;  %712 = vst.msk [vmem:[%s947_s22 + $0x1c8] sm:$0xff] %vm655_vm0, %v615_v6  ;;  %v476_v11 = vpop.permute.xlu1 %475  ;;  %v471_v12 = vpop.permute.xlu0 %470  ;;  %v258_v5 = vld [vmem:[%s938_s19 + $0x2a0] sm:$0xff]  ;;  %v259_v6 = vld [vmem:[%s938_s19 + $0x2a8] sm:$0xff] }
  0xc7   : > { %v620_v13 = vmul.f32 %v476_v11, %v236_v7  ;;  %v621_v14 = vmul.f32 %v476_v11, %v237_v8  ;;  %v618_v15 = vmul.f32 %v471_v12, %v234_v9  ;;  %v619_v16 = vmul.f32 %v471_v12, %v235_v10 }
  0xc9   : > { %717 = vst [vmem:[%s947_s22 + $0x1f0] sm:$0xff] %v620_v13  ;;  %718 = vst.msk [vmem:[%s947_s22 + $0x1f8] sm:$0xff] %vm655_vm0, %v621_v14  ;;  %v264_v13 = vld [vmem:[%s938_s19 + $0x2d0] sm:$0xff]  ;;  %v265_v14 = vld [vmem:[%s938_s19 + $0x2d8] sm:$0xff] }
  0xca   : > { %715 = vst [vmem:[%s947_s22 + $0x1e0] sm:$0xff] %v618_v15  ;;  %716 = vst.msk [vmem:[%s947_s22 + $0x1e8] sm:$0xff] %vm655_vm0, %v619_v16  ;;  %v486_v21 = vpop.permute.xlu1 %485  ;;  %v481_v22 = vpop.permute.xlu0 %480  ;;  %v262_v15 = vld [vmem:[%s938_s19 + $0x2c0] sm:$0xff]  ;;  %v263_v16 = vld [vmem:[%s938_s19 + $0x2c8] sm:$0xff] }
  0xcb   : > { %v624_v23 = vmul.f32 %v486_v21, %v240_v17  ;;  %v625_v24 = vmul.f32 %v486_v21, %v241_v18  ;;  %v622_v25 = vmul.f32 %v481_v22, %v238_v19  ;;  %v623_v26 = vmul.f32 %v481_v22, %v239_v20 }
  0xcd   : > { %721 = vst [vmem:[%s947_s22 + $0x210] sm:$0xff] %v624_v23  ;;  %722 = vst.msk [vmem:[%s947_s22 + $0x218] sm:$0xff] %vm655_vm0, %v625_v24  ;;  %v268_v23 = vld [vmem:[%s938_s19 + $0x2f0] sm:$0xff]  ;;  %v269_v24 = vld [vmem:[%s938_s19 + $0x2f8] sm:$0xff] }
  0xce   : > { %719 = vst [vmem:[%s947_s22 + $0x200] sm:$0xff] %v622_v25  ;;  %720 = vst.msk [vmem:[%s947_s22 + $0x208] sm:$0xff] %vm655_vm0, %v623_v26  ;;  %v496_v31 = vpop.permute.xlu1 %495  ;;  %v491_v32 = vpop.permute.xlu0 %490  ;;  %v266_v25 = vld [vmem:[%s938_s19 + $0x2e0] sm:$0xff]  ;;  %v267_v26 = vld [vmem:[%s938_s19 + $0x2e8] sm:$0xff] }
  0xcf   : > { %v628_v33 = vmul.f32 %v496_v31, %v244_v27  ;;  %v629_v34 = vmul.f32 %v496_v31, %v245_v28  ;;  %v626_v35 = vmul.f32 %v491_v32, %v242_v29  ;;  %v627_v36 = vmul.f32 %v491_v32, %v243_v30 }
  0xd1   : > { %725 = vst [vmem:[%s947_s22 + $0x230] sm:$0xff] %v628_v33  ;;  %726 = vst.msk [vmem:[%s947_s22 + $0x238] sm:$0xff] %vm655_vm0, %v629_v34 }
  0xd2   : > { %723 = vst [vmem:[%s947_s22 + $0x220] sm:$0xff] %v626_v35  ;;  %724 = vst.msk [vmem:[%s947_s22 + $0x228] sm:$0xff] %vm655_vm0, %v627_v36  ;;  %v506_v41 = vpop.permute.xlu1 %505  ;;  %v501_v42 = vpop.permute.xlu0 %500 }
  0xd3   : > { %v632_v43 = vmul.f32 %v506_v41, %v248_v37  ;;  %v633_v44 = vmul.f32 %v506_v41, %v249_v38  ;;  %v630_v45 = vmul.f32 %v501_v42, %v246_v39  ;;  %v631_v46 = vmul.f32 %v501_v42, %v247_v40 }
  0xd5   : > { %729 = vst [vmem:[%s947_s22 + $0x250] sm:$0xff] %v632_v43  ;;  %730 = vst.msk [vmem:[%s947_s22 + $0x258] sm:$0xff] %vm655_vm0, %v633_v44 }
  0xd6   : > { %727 = vst [vmem:[%s947_s22 + $0x240] sm:$0xff] %v630_v45  ;;  %728 = vst.msk [vmem:[%s947_s22 + $0x248] sm:$0xff] %vm655_vm0, %v631_v46  ;;  %v516_v51 = vpop.permute.xlu1 %515  ;;  %v511_v52 = vpop.permute.xlu0 %510 }
  0xd7   : > { %v636_v53 = vmul.f32 %v516_v51, %v252_v47  ;;  %v637_v54 = vmul.f32 %v516_v51, %v253_v48  ;;  %v634_v55 = vmul.f32 %v511_v52, %v250_v49  ;;  %v635_v56 = vmul.f32 %v511_v52, %v251_v50 }
  0xd9   : > { %733 = vst [vmem:[%s947_s22 + $0x270] sm:$0xff] %v636_v53  ;;  %734 = vst.msk [vmem:[%s947_s22 + $0x278] sm:$0xff] %vm655_vm0, %v637_v54 }
  0xda   : > { %731 = vst [vmem:[%s947_s22 + $0x260] sm:$0xff] %v634_v55  ;;  %732 = vst.msk [vmem:[%s947_s22 + $0x268] sm:$0xff] %vm655_vm0, %v635_v56  ;;  %v526_v61 = vpop.permute.xlu1 %525  ;;  %v521_v62 = vpop.permute.xlu0 %520 }
  0xdb   : > { %v640_v63 = vmul.f32 %v526_v61, %v256_v57  ;;  %v641_v0 = vmul.f32 %v526_v61, %v257_v58  ;;  %v638_v1 = vmul.f32 %v521_v62, %v254_v59  ;;  %v639_v2 = vmul.f32 %v521_v62, %v255_v60 }
  0xdd   : > { %737 = vst [vmem:[%s947_s22 + $0x290] sm:$0xff] %v640_v63  ;;  %738 = vst.msk [vmem:[%s947_s22 + $0x298] sm:$0xff] %vm655_vm0, %v641_v0 }
  0xde   : > { %735 = vst [vmem:[%s947_s22 + $0x280] sm:$0xff] %v638_v1  ;;  %736 = vst.msk [vmem:[%s947_s22 + $0x288] sm:$0xff] %vm655_vm0, %v639_v2  ;;  %v536_v7 = vpop.permute.xlu1 %535  ;;  %v531_v8 = vpop.permute.xlu0 %530 }
  0xdf   : > { %v644_v9 = vmul.f32 %v536_v7, %v260_v3  ;;  %v645_v10 = vmul.f32 %v536_v7, %v261_v4  ;;  %v642_v11 = vmul.f32 %v531_v8, %v258_v5  ;;  %v643_v12 = vmul.f32 %v531_v8, %v259_v6 }
  0xe1   : > { %741 = vst [vmem:[%s947_s22 + $0x2b0] sm:$0xff] %v644_v9  ;;  %742 = vst.msk [vmem:[%s947_s22 + $0x2b8] sm:$0xff] %vm655_vm0, %v645_v10 }
  0xe2   : > { %739 = vst [vmem:[%s947_s22 + $0x2a0] sm:$0xff] %v642_v11  ;;  %740 = vst.msk [vmem:[%s947_s22 + $0x2a8] sm:$0xff] %vm655_vm0, %v643_v12  ;;  %v546_v17 = vpop.permute.xlu1 %545  ;;  %v541_v18 = vpop.permute.xlu0 %540 }
  0xe3   : > { %v648_v19 = vmul.f32 %v546_v17, %v264_v13  ;;  %v649_v20 = vmul.f32 %v546_v17, %v265_v14  ;;  %v646_v21 = vmul.f32 %v541_v18, %v262_v15  ;;  %v647_v22 = vmul.f32 %v541_v18, %v263_v16 }
  0xe5   : > { %745 = vst [vmem:[%s947_s22 + $0x2d0] sm:$0xff] %v648_v19  ;;  %746 = vst.msk [vmem:[%s947_s22 + $0x2d8] sm:$0xff] %vm655_vm0, %v649_v20 }
  0xe6   : > { %743 = vst [vmem:[%s947_s22 + $0x2c0] sm:$0xff] %v646_v21  ;;  %744 = vst.msk [vmem:[%s947_s22 + $0x2c8] sm:$0xff] %vm655_vm0, %v647_v22  ;;  %v556_v27 = vpop.permute.xlu1 %555  ;;  %v551_v28 = vpop.permute.xlu0 %550 }
  0xe7   : > { %v652_v29 = vmul.f32 %v556_v27, %v268_v23  ;;  %v653_v30 = vmul.f32 %v556_v27, %v269_v24  ;;  %v650_v31 = vmul.f32 %v551_v28, %v266_v25  ;;  %v651_v32 = vmul.f32 %v551_v28, %v267_v26 }
  0xe9   : > { %749 = vst [vmem:[%s947_s22 + $0x2f0] sm:$0xff] %v652_v29  ;;  %750 = vst.msk [vmem:[%s947_s22 + $0x2f8] sm:$0xff] %vm655_vm0, %v653_v30 }
  0xea   : > { %747 = vst [vmem:[%s947_s22 + $0x2e0] sm:$0xff] %v650_v31  ;;  %748 = vst.msk [vmem:[%s947_s22 + $0x2e8] sm:$0xff] %vm655_vm0, %v651_v32 }
  0xeb PF: > { %s12_s9 = sadd.s32 1, %s852_s9  }
  0xec   : > { %p9_p4 = scmp.ge.s32.totalorder %s12_s9, 4  }
  0xee   :  { %11 = sbr.rel (!%p9_p4) target bundleno = 1 (0x1), region = 61 }

</bundles_post_ra>
